<compile_context>
chip_gen: v6e
topology: v6e:2x2x1
jax: 0.10.0
libtpu: 0.0.40
codegen_flags: <defaults>
</compile_context>

<pallas_src>
import jax
import jax.numpy as jnp
from jax.experimental import pallas as pl
from jax.experimental.pallas import tpu as pltpu


def _linear_kernel(w_ref, b_ref, x_ref, o_ref):
    # w_ref: (3,)  f32 SMEM   (scalar reads)
    # b_ref: (1,)  f32 SMEM
    # x_ref: (3, TB) f32 VMEM (batch on lanes)
    # o_ref: (1, TB) f32 VMEM (lane-dense output)
    y = (w_ref[0] * x_ref[0:1, :]
         + w_ref[1] * x_ref[1:2, :]
         + w_ref[2] * x_ref[2:3, :]
         + b_ref[0])
    o_ref[...] = y.astype(o_ref.dtype)


def multivariate_linear_regression(x, weight, bias, *, tb=2048):
    """x: (B, 3) f32, weight: (1, 3) f32, bias: (1,) f32 -> (B, 1) f32."""
    B, in_f = x.shape
    out_f = weight.shape[0]
    assert in_f == 3 and out_f == 1

    # Batch-on-lanes layout; pad B up to a multiple of the tile so every
    # block is (3, TB) with TB a multiple of 128 (lane-dense, (8,128)-legal).
    num_tiles = pl.cdiv(B, tb)
    b_padded = num_tiles * tb
    x_t = jnp.pad(x.T, ((0, 0), (0, b_padded - B)))  # (3, B_padded)

    w_flat = weight.reshape(in_f).astype(jnp.float32)   # (3,) -> SMEM
    b_flat = bias.reshape(out_f).astype(jnp.float32)    # (1,) -> SMEM

    out = pl.pallas_call(
        _linear_kernel,
        out_shape=jax.ShapeDtypeStruct((1, b_padded), x.dtype),
        grid=(num_tiles,),
        in_specs=[
            pl.BlockSpec(memory_space=pltpu.MemorySpace.SMEM),   # weight
            pl.BlockSpec(memory_space=pltpu.MemorySpace.SMEM),   # bias
            pl.BlockSpec((in_f, tb), lambda i: (0, i)),          # x (3, TB)
        ],
        out_specs=pl.BlockSpec((1, tb), lambda i: (0, i)),       # y (1, TB)
        compiler_params=pltpu.CompilerParams(
            dimension_semantics=("parallel",),   # batch tiles are independent
        ),
    )(w_flat, b_flat, x_t)

    # Lane-dense (1, B_padded) -> PyTorch-shaped (B, 1), done in the wrapper.
    return out[0, :B].reshape(B, out_f)


if __name__ == "__main__":
    key = jax.random.PRNGKey(0)
    kx, kw, kb = jax.random.split(key, 3)

    # Small-but-multi-tile batch (B not a multiple of the tile exercises the
    # cdiv + padding path); features fixed at 3 / 1 by the module.
    B, IN, OUT = 300, 3, 1

    # Deterministic parameter init mimicking nn.Linear default:
    # U(-1/sqrt(in_features), 1/sqrt(in_features))
    bound = 1.0 / jnp.sqrt(jnp.float32(IN))
    weight = jax.random.uniform(kw, (OUT, IN), jnp.float32, -bound, bound)
    bias = jax.random.uniform(kb, (OUT,), jnp.float32, -bound, bound)

    x = jax.random.normal(kx, (B, IN), jnp.float32)

    out = multivariate_linear_regression(x, weight, bias, tb=128)
    out = jax.block_until_ready(out)

    # Correctness check against plain-JAX reference
    ref = x @ weight.T + bias
    assert out.shape == (B, OUT)
    assert jnp.allclose(out, ref, atol=1e-5, rtol=1e-5)

    print("KERNEL_OK")
</pallas_src>

<mosaic_0001>
module attributes {stable_mosaic.version = 11 : i64} {
  func.func @_linear_kernel(%arg0: i32, %arg1: memref<3xf32, #tpu.memory_space<smem>>, %arg2: memref<1xf32, #tpu.memory_space<smem>>, %arg3: memref<3x128xf32, #tpu.memory_space<vmem>>, %arg4: memref<1x128xf32, #tpu.memory_space<vmem>>) attributes {dimension_semantics = [#tpu.dimension_semantics<parallel>], iteration_bounds = array<i64: 3>, scalar_prefetch = 0 : i64, scratch_operands = 0 : i64, tpu.core_type = #tpu.core_type<tc>, window_params = [{transform_indices = @transform_0, window_bounds = array<i64: 3>}, {transform_indices = @transform_1, window_bounds = array<i64: 1>}, {transform_indices = @transform_2, window_bounds = array<i64: 3, 128>}, {transform_indices = @transform_3, window_bounds = array<i64: 1, 128>}]} {
    %c0 = arith.constant 0 : index
    %0 = memref.load %arg1[%c0] : memref<3xf32, #tpu.memory_space<smem>>
    %c0_0 = arith.constant 0 : index
    %c0_1 = arith.constant 0 : index
    %1 = vector.load %arg3[%c0_0, %c0_1] : memref<3x128xf32, #tpu.memory_space<vmem>>, vector<1x128xf32>
    %2 = vector.broadcast %0 : f32 to vector<1x128xf32>
    %3 = arith.mulf %2, %1 : vector<1x128xf32>
    %c1 = arith.constant 1 : index
    %4 = memref.load %arg1[%c1] : memref<3xf32, #tpu.memory_space<smem>>
    %c1_2 = arith.constant 1 : index
    %c0_3 = arith.constant 0 : index
    %5 = vector.load %arg3[%c1_2, %c0_3] : memref<3x128xf32, #tpu.memory_space<vmem>>, vector<1x128xf32>
    %6 = vector.broadcast %4 : f32 to vector<1x128xf32>
    %7 = arith.mulf %6, %5 : vector<1x128xf32>
    %8 = arith.addf %3, %7 : vector<1x128xf32>
    %c2 = arith.constant 2 : index
    %9 = memref.load %arg1[%c2] : memref<3xf32, #tpu.memory_space<smem>>
    %c2_4 = arith.constant 2 : index
    %c0_5 = arith.constant 0 : index
    %10 = vector.load %arg3[%c2_4, %c0_5] : memref<3x128xf32, #tpu.memory_space<vmem>>, vector<1x128xf32>
    %11 = vector.broadcast %9 : f32 to vector<1x128xf32>
    %12 = arith.mulf %11, %10 : vector<1x128xf32>
    %13 = arith.addf %8, %12 : vector<1x128xf32>
    %c0_6 = arith.constant 0 : index
    %14 = memref.load %arg2[%c0_6] : memref<1xf32, #tpu.memory_space<smem>>
    %15 = vector.broadcast %14 : f32 to vector<1x128xf32>
    %16 = arith.addf %13, %15 : vector<1x128xf32>
    %c0_7 = arith.constant 0 : index
    %c0_8 = arith.constant 0 : index
    %17 = vector.load %arg4[%c0_7, %c0_8] : memref<1x128xf32, #tpu.memory_space<vmem>>, vector<1x128xf32>
    tpu.vector_store %arg4[%c0_7, %c0_8], %16 {strides = array<i32>} : memref<1x128xf32, #tpu.memory_space<vmem>>, vector<1x128xf32>,
    return
  }
  func.func @transform_0(%arg0: i32) -> i32 {
    %c0_i32 = arith.constant 0 : i32
    %c0_i32_0 = arith.constant 0 : i32
    return %c0_i32 : i32
  }
  func.func @transform_1(%arg0: i32) -> i32 {
    %c0_i32 = arith.constant 0 : i32
    %c0_i32_0 = arith.constant 0 : i32
    return %c0_i32 : i32
  }
  func.func @transform_2(%arg0: i32) -> (i32, i32) {
    %c0_i32 = arith.constant 0 : i32
    %c0_i32_0 = arith.constant 0 : i32
    return %c0_i32, %arg0 : i32, i32
  }
  func.func @transform_3(%arg0: i32) -> (i32, i32) {
    %c0_i32 = arith.constant 0 : i32
    %c0_i32_0 = arith.constant 0 : i32
    return %c0_i32, %arg0 : i32, i32
  }
}

</mosaic_0001>

<bundles_post_ra>
// kernel: tpu_custom_call.1
= control target key start
LH: loop header
LB: loop body
LE: loop exit
PB: predicated region body
PF: predicated region fallthrough
CT: control target
= control target key end

     0   :  { %s690_s0 = inlined_call_operand.vmem [shape: f32[3], index: 0, kind: input, shape index: {}]   ;;  %s691_s1 = inlined_call_operand.<no memory space> [shape: f32[1], index: 1, kind: input, shape index: {}]   ;;  %s692_s2 = inlined_call_operand.hbm [shape: f32[3,384], index: 2, kind: input, shape index: {}]   ;;  %s693_s3 = inlined_call_operand.hbm [shape: f32[1,384], index: 3, kind: output, shape index: {}]  }
   0x1   :  { %8 = sst [smem:[#allocation2]] %s691_s1 }
   0x2   :  { %9 = vsyncpa [#allocation6], 0 }
   0x3   :  { %10 = vsyncpa [#allocation4], 0 }
   0x4   :  { %12 = vsyncpa [#allocation4 + $0x1], 0 }
   0x5   :  { %13 = vsyncpa [#allocation5], 0 }
   0x6   :  { %15 = vsyncpa [#allocation5 + $0x1], 0  ;;  %s519_s14 = smov 0   ;;  %s521_s15 = smov 0  }
   0x7   :  { %s523_s16 = smov 0   ;;  %s525_s17 = smov 0  }
   0x8 LB: > { %s540_s1 = sadd.s32 4294967295, %s491_s17   ;;  %s309_s18 = sadd.s32 4294967294, %s491_s17   ;;  %s491_s17 = sphi %s525_s17, %s715_s17   ;;  %s487_s16 = sphi %s523_s16, %s714_s16   ;;  %s483_s15 = sphi %s521_s15, %s713_s15   ;;  %s479_s14 = sphi %s519_s14, %s712_s14  }
   0x9   : > { %p83_p0 = scmp.ne.s32.totalorder %s483_s15, %s479_s14  ;;  %p694_p1 = scmp.eq.s32.totalorder %s540_s1, 0 }
   0xa   : > { %p113_p3 = scmp.eq.s32.totalorder %s309_s18, 2  ;;  %p310_p5 = scmp.ge.s32.totalorder %s491_s17, 1 }
   0xb   : > { %p549_p4 = por %p694_p1, %p83_p0  ;;  %p120_p7 = scmp.lt.s32.totalorder %s491_s17, 4 }
   0xc   : > { %p554_p6 = por %p113_p3, %p83_p0  ;;  %s133_s23 = sshll.u32 %s690_s0, 4  ;;  %s134_s23 = int_to_ptr.vmem [resolvable:$true] %s133_s23 }
   0xd   : > { %s698_s19 = scalar_select %p549_p4, 1, 0 }
   0xe   : > { %s699_s20 = scalar_select %p554_p6, 1, 0 }
   0xf   : > { %p562_p8 = pnand %p310_p5, %p120_p7  ;;  %s569_s25 = sadd.s32 1, %s491_s17  }
  0x10   : > { %s67_s27 = ssub.s32 %s491_s17, %s569_s25  ;;  %s70_s29 = sadd.s32 1, %s487_s16 }
  0x11   : > { %s700_s24 = scalar_select %p562_p8, 1, 0 }
  0x12   : > { %p331_p9 = pneg %p562_p8  ;;  %p579_p11 = scmp.eq.s32.totalorder %s67_s27, 0 }
  0x13   : > { %p77_p12 = scmp.ne.s32.totalorder %s487_s16, %s483_s15  ;;  %s380_s30 = scalar_lea.vmem %s134_s23, 16 }
  0x14   : > { %p573_p10 = pnand %p331_p9, %p694_p1  ;;  %p381_p13 = scmp.ne.s32.totalorder %s134_s23, %s380_s30 }
  0x15   : > { %p388_p7 = scmp.lt.s32.totalorder %s134_s23, %s134_s23  ;;  %p389_p2 = scmp.lt.s32.totalorder %s380_s30, %s380_s30 }
  0x16   : > { %p382_p0 = pneg %p573_p10 }
  0x17   : > { %p390_p9 = por %p389_p2, %p388_p7 }
  0x18   : > { %p383_p3 = pnand %p382_p0, %p381_p13 }
  0x1a   : > { %p384_p5 = pneg %p383_p3 }
  0x1c   : > { %p391_p1 = pnand %p390_p9, %p384_p5 }
  0x1e   : > { %394 = shalt.err (!%p391_p1)
}
  0x1f   : > { %s493_s4 = smov [#allocation3]   ;;  %p78_p2 = scmp.eq.s32.totalorder %s491_s17, 0 }
  0x20   : > { %334 = dma.vmem_to_smem (!%p573_p10), %s134_s23, 16, %s493_s4, [#allocation6]  }
  0x21   : > { %s593_s5 = scalar_select %p579_p11, %s487_s16, %s70_s29  }
  0x22   : > { %p703_p1 = scmp.eq.s32.totalorder %s540_s1, 2  ;;  %p344_p0 = scmp.lt.s32.totalorder %s491_s17, 3 }
  0x23   : > { %s147_s7 = sand.u32 1, %s487_s16   ;;  %p79_p3 = por %p78_p2, %p77_p12 }
  0x24   : > { %p601_p13 = por %p703_p1, %p77_p12  ;;  %s313_s8 = sshll.u32 %s147_s7, 2 }
  0x25   : > { %s314_s9 = sshll.u32 %s491_s17, 6  ;;  %s151_s13 = scalar_lea.vmem [#allocation7], %s313_s8 }
  0x26   : > { %s704_s6 = scalar_select %p601_p13, 1, 0 }
  0x27   : > { %s614_s12 = scalar_lea.hbm %s692_s2, %s314_s9  ;;  %s158_s18 = sshll.u32 %s151_s13, 4  ;;  %s159_s18 = int_to_ptr.vmem [resolvable:$true] %s158_s18 }
  0x28   : > { %p616_p10 = pnand %p344_p0, %p79_p3  ;;  %s148_s22 = scalar_lea.sflag [#allocation4], %s147_s7 }
  0x29   : > { %s395_s23 = scalar_lea.hbm %s614_s12, 64  ;;  %s400_s28 = scalar_lea.hbm %s692_s2, 192 }
  0x2a   : > { %p396_p11 = scmp.ne.s32.totalorder %s614_s12, %s395_s23  ;;  %p397_p12 = pneg %p616_p10 }
  0x2b   : > { %p401_p9 = scmp.lt.s32.totalorder %s614_s12, %s692_s2  ;;  %p402_p2 = scmp.lt.s32.totalorder %s400_s28, %s395_s23 }
  0x2c   : > { %p398_p5 = pnand %p397_p12, %p396_p11 }
  0x2d   : > { %p403_p1 = por %p402_p2, %p401_p9 }
  0x2e   : > { %p399_p7 = pneg %p398_p5 }
  0x30   : > { %p404_p0 = pnand %p403_p1, %p399_p7 }
  0x32   : > { %407 = shalt.err (!%p404_p0)
}
  0x33   : > { %s408_s4 = scalar_lea.vmem %s159_s18, 64  ;;  %s494_s7 = smov [#allocation7]  }
  0x34   : > { %p409_p3 = scmp.ne.s32.totalorder %s159_s18, %s408_s4  ;;  %s413_s8 = sshll.u32 %s494_s7, 4  ;;  %s414_s8 = int_to_ptr.vmem [resolvable:$false] %s413_s8 }
  0x35   : > { %s415_s9 = scalar_lea.vmem %s414_s8, 128  ;;  %p416_p11 = scmp.lt.s32.totalorder %s159_s18, %s414_s8 }
  0x36   : > { %p411_p6 = pnand %p409_p3, %p397_p12  ;;  %p417_p5 = scmp.lt.s32.totalorder %s415_s9, %s408_s4 }
  0x38   : > { %p412_p13 = pneg %p411_p6  ;;  %p418_p4 = por %p417_p5, %p416_p11 }
  0x3a   : > { %p419_p8 = pnand %p418_p4, %p412_p13 }
  0x3c   : > { %422 = shalt.err (!%p419_p8)
}
  0x3d   : > { %338 = dma.hbm_to_vmem [thread:$0]  (!%p616_p10), %s614_s12, 64, %s159_s18, %s148_s22  }
  0x3e   : > { %p706_p7 = scmp.ne.s32.totalorder %s700_s24, 0 }
  0x3f   : > { %p707_p9 = scmp.eq.s32.totalorder (!%p706_p7), %s540_s1, 0 }
  0x40   : > { %167 = sbr.rel (%p706_p7) target bundleno = 105 (0x69), region = 32 }
  0x45   : > { %466 = dma.done.wait (%p707_p9), [#allocation6], 16   ;;  %p708_p6 = pmov %p707_p9 }
  0x46   : > { %s641_s10 = sand.u32 1, %s483_s15   ;;  %p709_p4 = scmp.ne.s32.totalorder %s698_s19, 0 }
  0x47   : > { %468 = vsyncadd (%p708_p6), [#allocation6], 4294967280  ;;  %s317_s11 = sshll.u32 %s641_s10, 2  ;;  %s174_s13 = scalar_lea.sflag [#allocation4], %s641_s10 }
  0x48   : > { %s177_s21 = scalar_lea.vmem [#allocation7], %s317_s11 }
  0x49   : > { %470 = dma.done.wait (%p709_p4), %s174_s13, 64  }
  0x4a   : > { %472 = vsyncadd (%p709_p4), %s174_s13, 4294967232 }
  0x4b   : > { %182 = sfence }
  0x4c   : > { %s200_s24 = sld [smem:[#allocation3]]  ;;  %v201_v0 = vld [vmem:[%s177_s21] sm:$0x1]  ;;  %v205_v1 = vld [vmem:[%s177_s21 + $0x1] sm:$0x1]  ;;  %s199_s19 = scalar_lea.vmem [#allocation8], %s641_s10 }
  0x4d   : > { %s318_s12 = sld [smem:[#allocation3 + $0x1]]  ;;  %v210_v3 = vld [vmem:[%s177_s21 + $0x2] sm:$0x1]  ;;  %s231_s23 = sshll.u32 %s199_s19, 4  ;;  %s651_s23 = int_to_ptr.vmem [resolvable:$true] %s231_s23 }
  0x4e   : > { %s319_s18 = sld [smem:[#allocation3 + $0x2]]  ;;  %s320_s26 = sshll.u32 %s540_s1, 4 }
  0x4f   : > { %s214_s22 = sld [smem:[#allocation2]]  ;;  %s229_s29 = scalar_lea.hbm %s693_s3, %s320_s26 }
  0x50   : > { %s219_s30 = scalar_lea.sflag [#allocation5], %s641_s10  ;;  %s423_s4 = scalar_lea.vmem %s651_s23, 16 }
  0x51   : > { %p424_p8 = scmp.ne.s32.totalorder %s651_s23, %s423_s4  ;;  %p710_p13 = scmp.ne.s32.totalorder %s704_s6, 0 }
  0x52   : > { %v202_v2 = vstv %s200_s24  ;;  %s495_s7 = smov [#allocation8]  }
  0x53   : > { %v203_v4 = vmul.f32 %v202_v2, %v201_v0  ;;  %v206_v5 = vstv %s318_s12  ;;  %p425_p10 = pnand %p424_p8, %p710_p13  ;;  %s427_s1 = sshll.u32 %s495_s7, 4  ;;  %s428_s1 = int_to_ptr.vmem [resolvable:$false] %s427_s1 }
  0x54   : > { %v207_v6 = vmul.f32 %v206_v5, %v205_v1  ;;  %v211_v7 = vstv %s319_s18  ;;  %s429_s8 = scalar_lea.vmem %s428_s1, 32  ;;  %p430_p2 = scmp.lt.s32.totalorder %s651_s23, %s428_s1 }
  0x55   : > { %v212_v8 = vmul.f32 %v211_v7, %v210_v3  ;;  %v215_v10 = vstv %s214_s22  ;;  %p426_p12 = pneg %p425_p10  ;;  %p431_p1 = scmp.lt.s32.totalorder %s429_s8, %s423_s4 }
  0x56   : > { %v208_v9 = vadd.f32 %v207_v6, %v203_v4 }
  0x57   : > { %p432_p0 = por %p431_p1, %p430_p2 }
  0x58   : > { %v213_v11 = vadd.f32 %v212_v8, %v208_v9 }
  0x59   : > { %p433_p3 = pnand %p432_p0, %p426_p12 }
  0x5a   : > { %v216_v12 = vadd.f32 %v215_v10, %v213_v11 }
  0x5c   : > { %217 = vst [vmem:[%s199_s19] sm:$0x1] %v216_v12 }
  0x5d   : > { %436 = shalt.err (!%p433_p3)
}
  0x5e   : > { %s437_s9 = scalar_lea.hbm %s229_s29, 16  ;;  %s441_s13 = scalar_lea.hbm %s693_s3, 48 }
  0x5f   : > { %p438_p11 = scmp.ne.s32.totalorder %s229_s29, %s437_s9  ;;  %p442_p9 = scmp.lt.s32.totalorder %s229_s29, %s693_s3 }
  0x60   : > { %p443_p6 = scmp.lt.s32.totalorder %s441_s13, %s437_s9 }
  0x61   : > { %p439_p5 = pnand %p438_p11, %p710_p13 }
  0x62   : > { %p444_p4 = por %p443_p6, %p442_p9 }
  0x63   : > { %p440_p7 = pneg %p439_p5 }
  0x65   : > { %p445_p8 = pnand %p444_p4, %p440_p7 }
  0x67   : > { %448 = shalt.err (!%p445_p8)
}
  0x68   : > { %329 = dma.vmem_to_hbm [thread:$0]  (%p710_p13), %s651_s23, 16, %s229_s29, %s219_s30  }
  0x69 PF: > { %p346_p10 = scmp.ge.s32.totalorder %s491_s17, 2  ;;  %s243_s12 = sand.u32 1, %s479_s14  }
  0x6a   : > { %p711_p12 = scmp.ne.s32.totalorder %s699_s20, 0  ;;  %s244_s18 = scalar_lea.sflag [#allocation5], %s243_s12 }
  0x6c   : > { %p340_p2 = pnand %p346_p10, %p711_p12 }
  0x6e   : > { %p341_p1 = pneg %p340_p2 }
  0x70   : > { %474 = dma.done.wait (%p341_p1), %s244_s18, 16  }
  0x71   : > { %476 = vsyncadd (%p341_p1), %s244_s18, 4294967280  ;;  %p18_p0 = scmp.ge.s32.totalorder %s569_s25, 5   ;;  %s712_s14 = smov %s483_s15 }
  0x72   : > { %s713_s15 = smov %s487_s16  ;;  %s714_s16 = smov %s593_s5 }
  0x73   : > { %s715_s17 = smov %s569_s25  ;;  %20 = sbr.rel (!%p18_p0) target bundleno = 8 (0x8), region = 82 }
  0x78   :  { %248 = vsyncpa [#allocation4], 1 }
  0x79   :  { %250 = vsyncpa [#allocation4 + $0x1], 1 }
  0x7a   :  { %251 = vsyncpa [#allocation5], 1 }
  0x7b   :  { %253 = vsyncpa [#allocation5 + $0x1], 1 }
  0x7c   :  { %254 = vsyncpa [#allocation6], 1 }
  0x7d   :  { %256 = vsyncpa [#allocation6 + $0x1], 1 }

</bundles_post_ra>
